<compile_context>
chip_gen: v6e
topology: v6e:2x2x1
jax: 0.10.0
libtpu: 0.0.40
codegen_flags: <defaults>
</compile_context>

<pallas_src>
import functools
import math

import numpy as np

import jax
import jax.numpy as jnp
from jax.experimental import pallas as pl
from jax.experimental.pallas import tpu as pltpu


# --------------------------------- Pallas kernel -------------------------------
def _mutual_attention_kernel(inv_s, bpc, q, w, x1_ref, x2_ref, a_ref, bp_ref,
                             bn_ref, w1a_ref, w1b_ref, w2_ref, y_ref):
    # Per grid step (one batch element):
    #   x1_ref : (rows, 2q*W)  packed full-res input  (2q image rows per kernel row)
    #   x2_ref : (rows, q*w)   packed low-res input   (q image rows per kernel row)
    #   a_ref  : (q*w, 2q*W)   fused vertical+horizontal bilinear matrix (in-row terms)
    #   bp_ref : (w,   2q*W)   boundary matrix: 0.25*M into output row-block 0
    #   bn_ref : (w,   2q*W)   boundary matrix: 0.25*M into output row-block 2q-1
    #   w1a/w1b: (Cr, rows)    fc1 weight halves, columns repeated bpc (=h/q) times
    #   w2_ref : (rows, Cr)    fc2 weight, rows repeated bpc times
    x2p = x2_ref[...].astype(jnp.float32)

    # Cross-kernel-row vertical neighbours: only the first/last packed low-res row
    # of each kernel row needs data from the adjacent kernel row.  These are narrow
    # (rows, w) slices; per-channel edge clamp via a sublane iota mask.  (The bulk
    # of the vertical stencil lives inside the constant matmul matrix `a_ref`.)
    first = x2p[:, :w]                       # local low-res row 0 of each kernel row
    last = x2p[:, (q - 1) * w:]              # local low-res row q-1
    prev_last = jnp.concatenate([last[:1], last[:-1]], axis=0)     # kernel row r-1
    next_first = jnp.concatenate([first[1:], first[-1:]], axis=0)  # kernel row r+1
    rid = jax.lax.broadcasted_iota(jnp.int32, first.shape, 0)
    jmod = rid % bpc
    prev_last = jnp.where(jmod == 0, first, prev_last)             # channel edge clamp
    next_first = jnp.where(jmod == bpc - 1, last, next_first)

    # Fused 2x bilinear upsample (align_corners=False): x2u comes out of the MXU
    # directly in the packed output layout -> no concatenate, single f32 temp.
    x2u = (jnp.dot(x2p, a_ref[...], preferred_element_type=jnp.float32)
           + jnp.dot(prev_last, bp_ref[...], preferred_element_type=jnp.float32)
           + jnp.dot(next_first, bn_ref[...], preferred_element_type=jnp.float32))

    # Channel gate: a = sigmoid(fc2(relu(fc1(avgpool(cat[x1, x2u]))))).
    # f32 pool sums (cast fused into the reduction); row-expanded fc weights fold
    # the per-channel reduction and per-row broadcast into the small matmuls.
    x1v = x1_ref[...]
    mrow1 = jnp.sum(x1v, axis=-1, keepdims=True, dtype=jnp.float32) * inv_s
    mrow2 = jnp.sum(x2u, axis=-1, keepdims=True) * inv_s
    hid = (jnp.dot(w1a_ref[...], mrow1, preferred_element_type=jnp.float32)
           + jnp.dot(w1b_ref[...], mrow2, preferred_element_type=jnp.float32))
    hid = jnp.maximum(hid, 0.0)                                    # ReLU
    gate = jax.nn.sigmoid(
        jnp.dot(w2_ref[...], hid, preferred_element_type=jnp.float32))  # (rows, 1)

    # y = x1*a + x2u*a == (x1 + x2u) * a.  Keep the epilogue in the input dtype for
    # sub-32-bit inputs (native bf16 VPU on v6e/v7x; correct-but-legalized on v5e).
    if x1v.dtype == jnp.float32:
        y_ref[...] = ((x1v + x2u) * gate).astype(y_ref.dtype)
    else:
        dt = x1v.dtype
        y_ref[...] = ((x1v + x2u.astype(dt)) * gate.astype(dt)).astype(y_ref.dtype)


# ----------------------------- constant matrices --------------------------------
def _bilinear_matrix_1d(n):
    """(n, 2n) matrix M with (row @ M) == 1-D bilinear 2x upsample of `row`
    matching nn.Upsample(scale_factor=2, mode='bilinear', align_corners=False)."""
    m = np.zeros((n, 2 * n), dtype=np.float32)
    for i in range(2 * n):
        src = max(i * 0.5 - 0.25, 0.0)
        i0 = int(math.floor(src))
        i1 = min(i0 + 1, n - 1)
        f = src - i0
        m[i0, i] += 1.0 - f
        m[i1, i] += f
    return m


def _upsample_matrices(w, q):
    """Fused vertical+horizontal 2x-bilinear matrices for the packed layout.

    Packed x2 kernel row = [low-res rows l=0..q-1], each w lanes.
    Packed y  kernel row = [full-res rows 2l, 2l+1 for l=0..q-1], each W=2w lanes.

    A       (q*w, 2qW): 0.75*M from row l into output blocks 2l/2l+1 plus the
                        0.25*M vertical-neighbour terms that stay inside the row.
    B_prev  (w,   2qW): 0.25*M into output block 0     (fed with prev row's last).
    B_next  (w,   2qW): 0.25*M into output block 2q-1  (fed with next row's first).
    """
    W = 2 * w
    M = _bilinear_matrix_1d(w)
    A = np.zeros((q * w, 2 * q * W), dtype=np.float32)
    for l in range(q):
        A[l * w:(l + 1) * w, (2 * l) * W:(2 * l + 1) * W] += 0.75 * M
        A[l * w:(l + 1) * w, (2 * l + 1) * W:(2 * l + 2) * W] += 0.75 * M
        if l >= 1:   # row l-1 contributes to the even output of row l
            A[(l - 1) * w:l * w, (2 * l) * W:(2 * l + 1) * W] += 0.25 * M
        if l <= q - 2:  # row l+1 contributes to the odd output of row l
            A[(l + 1) * w:(l + 2) * w, (2 * l + 1) * W:(2 * l + 2) * W] += 0.25 * M
    B_prev = np.zeros((w, 2 * q * W), dtype=np.float32)
    B_prev[:, 0:W] = 0.25 * M
    B_next = np.zeros((w, 2 * q * W), dtype=np.float32)
    B_next[:, (2 * q - 1) * W:] = 0.25 * M
    return A, B_prev, B_next


def _choose_pack(h, W):
    """Low-res rows packed per kernel row so the output lane width 2*q*W is a
    multiple of 128 (lane-dense, unmasked stores); fall back to q=1."""
    lane = 2 * W
    if lane % 128 == 0:
        return 1
    q = 128 // math.gcd(lane, 128)
    if q <= h and h % q == 0:
        return q
    return 1


# ---------------------------------- wrapper ------------------------------------
def make_mutual_attention(w1, w2, x1_shape, x2_shape, dtype=jnp.float32):
    """Precompute (hoist) all constant operands once and return apply(x1, x2)."""
    B, C, H, W = x1_shape
    Bb, Cb, h, w = x2_shape
    assert (B, C) == (Bb, Cb) and (H, W) == (2 * h, 2 * w), \
        "x1 must be 2x the spatial size of x2"
    Cr = w1.shape[0]
    assert w1.shape == (Cr, 2 * C) and w2.shape == (C, Cr)
    S = H * W

    # Packed layout parameters (output lane width is a multiple of 128 if possible).
    q = _choose_pack(h, W)           # low-res rows per kernel row
    R = 2 * q                        # full-res rows per kernel row
    rows = C * h // q                # kernel sublane rows (same for x1 / x2 / y views)
    bpc = h // q                     # kernel rows per channel
    lane_out = R * W                 # y / x1 lane width
    lane_in2 = q * w                 # x2 lane width

    # Constant operands: built ONCE here, reused on every apply (no per-call
    # jnp.repeat / matrix construction in the hot path).
    A_np, Bp_np, Bn_np = _upsample_matrices(w, q)
    A, Bp, Bn = jnp.asarray(A_np), jnp.asarray(Bp_np), jnp.asarray(Bn_np)
    w1f = jnp.asarray(w1, jnp.float32)
    w2f = jnp.asarray(w2, jnp.float32)
    w1a = jnp.repeat(w1f[:, :C], bpc, axis=1)        # (Cr, rows)  acts on mean(x1)
    w1b = jnp.repeat(w1f[:, C:], bpc, axis=1)        # (Cr, rows)  acts on mean(x2u)
    w2e = jnp.repeat(w2f, bpc, axis=0)               # (rows, Cr)

    # Generation-aware VMEM budget (no hard 64 MiB clamp): ~85% of physical VMEM.
    itemsize = jnp.dtype(dtype).itemsize
    io_block = (2 * C * H * W + C * h * w) * itemsize       # x1 + y + x2 blocks
    f32_tmp = 2 * C * H * W * 4                             # x2u + epilogue temps
    const_bytes = 4 * (A.size + Bp.size + Bn.size + w1a.size + w1b.size + w2e.size)
    need = 2 * io_block + f32_tmp + 2 * const_bytes + (2 << 20)
    try:
        vmem_phys = int(pltpu.get_tpu_info().vmem_capacity_bytes)
    except Exception:
        vmem_phys = 64 << 20          # conservative fallback (v7x-sized VMEM)
    budget = int(0.85 * vmem_phys)    # leave compiler-internal scratch headroom
    vmem_limit = int(min(max(need, 16 << 20), budget))

    cost = pl.CostEstimate(
        flops=int(B * (2 * rows * lane_out * (lane_in2 + 2 * w) + 10 * C * H * W)),
        transcendentals=int(2 * B * C),
        bytes_accessed=int(B * itemsize * (2 * C * H * W + C * h * w) + const_bytes),
    )

    kernel = functools.partial(_mutual_attention_kernel, 1.0 / S, bpc, q, w)

    # Constant operands have constant index_maps so they are DMA'd only once.
    def const_spec(shape):
        return pl.BlockSpec(shape, lambda b: (0, 0))

    call = pl.pallas_call(
        kernel,
        out_shape=jax.ShapeDtypeStruct((B, rows, lane_out), dtype),
        grid_spec=pltpu.PrefetchScalarGridSpec(
            num_scalar_prefetch=0,
            grid=(B,),
            in_specs=[
                pl.BlockSpec((pl.Squeezed(), rows, lane_out), lambda b: (b, 0, 0)),
                pl.BlockSpec((pl.Squeezed(), rows, lane_in2), lambda b: (b, 0, 0)),
                const_spec((lane_in2, lane_out)),
                const_spec((w, lane_out)),
                const_spec((w, lane_out)),
                const_spec((Cr, rows)),
                const_spec((Cr, rows)),
                const_spec((rows, Cr)),
            ],
            out_specs=pl.BlockSpec((pl.Squeezed(), rows, lane_out),
                                   lambda b: (b, 0, 0)),
        ),
        compiler_params=pltpu.CompilerParams(
            dimension_semantics=("parallel",),
            vmem_limit_bytes=vmem_limit,
        ),
        cost_estimate=cost,
    )

    # TODO(synk): two-phase row-tiled grid (phase 0: pooled sums -> scratch, phase 1: apply gate; row axis "parallel" for dual-TC on v7x / B==1) when the per-batch block exceeds ~50 MiB; single-pass kept where it fits (always preferable on v5e).

    @jax.jit
    def apply(x1, x2):
        # Free row-major reshapes (pure metadata on contiguous NCHW inputs).
        x1f = x1.reshape(B, rows, lane_out)
        x2f = x2.reshape(B, rows, lane_in2)
        yf = call(x1f, x2f, A, Bp, Bn, w1a, w1b, w2e)
        return yf.reshape(B, C, H, W)

    return apply


def mutual_attention(x1, x2, w1, w2):
    """One-shot convenience wrapper (prefer make_mutual_attention for repeated use)."""
    return make_mutual_attention(w1, w2, x1.shape, x2.shape, x1.dtype)(x1, x2)


# ------------------------------ pure-JAX reference -----------------------------
def bilinear_up2(x):
    """nn.Upsample(scale_factor=2, mode='bilinear', align_corners=False) on NCHW
    (gather-based, independent of the in-kernel matmul formulation)."""
    B, C, h, w = x.shape

    def idx_weights(n):
        i = jnp.arange(2 * n, dtype=jnp.float32)
        src = jnp.maximum(i * 0.5 - 0.25, 0.0)
        i0 = jnp.floor(src).astype(jnp.int32)
        i1 = jnp.minimum(i0 + 1, n - 1)
        frac = src - i0.astype(jnp.float32)
        return i0, i1, frac

    r0, r1, rf = idx_weights(h)
    c0, c1, cf = idx_weights(w)
    top = x[:, :, r0, :]
    bot = x[:, :, r1, :]
    xr = top * (1.0 - rf)[None, None, :, None] + bot * rf[None, None, :, None]
    left = xr[:, :, :, c0]
    right = xr[:, :, :, c1]
    return left * (1.0 - cf)[None, None, None, :] + right * cf[None, None, None, :]


def mutual_attention_ref(x1, x2, w1, w2):
    x2u = bilinear_up2(x2)
    xc = jnp.concatenate([x1, x2u], axis=1)
    pooled = jnp.mean(xc, axis=(2, 3), keepdims=True)               # (B, 2C, 1, 1)
    hmid = jnp.maximum(jnp.einsum('oi,bihw->bohw', w1, pooled), 0.0)
    a = jax.nn.sigmoid(jnp.einsum('oi,bihw->bohw', w2, hmid))
    return x1 * a + x2u * a


if __name__ == "__main__":
    key = jax.random.PRNGKey(0)
    B, C, H, W = 2, 32, 16, 16                                      # C // 16 = 2
    k1, k2, k3, k4 = jax.random.split(key, 4)

    x1 = jax.random.normal(k1, (B, C, H, W), jnp.float32)
    x2 = jax.random.normal(k2, (B, C, H // 2, W // 2), jnp.float32)

    Cr = C // 16
    # Deterministic stand-ins for Conv2d 1x1 weights (bias=False): fc1 (Cr, 2C), fc2 (C, Cr).
    b1 = 1.0 / (2 * C) ** 0.5
    w1 = jax.random.uniform(k3, (Cr, 2 * C), jnp.float32, -b1, b1)
    b2 = 1.0 / Cr ** 0.5
    w2 = jax.random.uniform(k4, (C, Cr), jnp.float32, -b2, b2)

    apply_fn = make_mutual_attention(w1, w2, x1.shape, x2.shape, x1.dtype)
    y = apply_fn(x1, x2)
    jax.block_until_ready(y)

    y_ref = mutual_attention_ref(x1, x2, w1, w2)
    assert y.shape == (B, C, H, W)
    max_err = float(jnp.max(jnp.abs(y - y_ref)))
    assert jnp.allclose(y, y_ref, atol=1e-4, rtol=1e-4), \
        f"mismatch vs reference (max err {max_err})"

    print("KERNEL_OK")
</pallas_src>

<mosaic_0001>
module attributes {stable_mosaic.version = 11 : i64} {
  func.func @_mutual_attention_kernel(%arg0: i32, %arg1: memref<1x64x128xf32, #tpu.memory_space<vmem>>, %arg2: memref<1x64x32xf32, #tpu.memory_space<vmem>>, %arg3: memref<32x128xf32, #tpu.memory_space<vmem>>, %arg4: memref<8x128xf32, #tpu.memory_space<vmem>>, %arg5: memref<8x128xf32, #tpu.memory_space<vmem>>, %arg6: memref<2x64xf32, #tpu.memory_space<vmem>>, %arg7: memref<2x64xf32, #tpu.memory_space<vmem>>, %arg8: memref<64x2xf32, #tpu.memory_space<vmem>>, %arg9: memref<1x64x128xf32, #tpu.memory_space<vmem>>) attributes {dimension_semantics = [#tpu.dimension_semantics<parallel>], iteration_bounds = array<i64: 2>, scalar_prefetch = 0 : i64, scratch_operands = 0 : i64, tpu.core_type = #tpu.core_type<tc>, window_params = [{transform_indices = @transform_0, window_bounds = array<i64: 1, 64, 128>}, {transform_indices = @transform_1, window_bounds = array<i64: 1, 64, 32>}, {pipeline_mode = #tpu.pipeline_mode<synchronous>, transform_indices = @transform_2, window_bounds = array<i64: 32, 128>}, {pipeline_mode = #tpu.pipeline_mode<synchronous>, transform_indices = @transform_3, window_bounds = array<i64: 8, 128>}, {pipeline_mode = #tpu.pipeline_mode<synchronous>, transform_indices = @transform_4, window_bounds = array<i64: 8, 128>}, {pipeline_mode = #tpu.pipeline_mode<synchronous>, transform_indices = @transform_5, window_bounds = array<i64: 2, 64>}, {pipeline_mode = #tpu.pipeline_mode<synchronous>, transform_indices = @transform_6, window_bounds = array<i64: 2, 64>}, {pipeline_mode = #tpu.pipeline_mode<synchronous>, transform_indices = @transform_7, window_bounds = array<i64: 64, 2>}, {transform_indices = @transform_8, window_bounds = array<i64: 1, 64, 128>}]} {
    %c0 = arith.constant 0 : index
    %c0_0 = arith.constant 0 : index
    %c0_1 = arith.constant 0 : index
    %0 = vector.load %arg2[%c0, %c0_0, %c0_1] : memref<1x64x32xf32, #tpu.memory_space<vmem>>, vector<1x64x32xf32>
    %1 = vector.shape_cast %0 : vector<1x64x32xf32> to vector<64x32xf32>
    %2 = vector.extract_strided_slice %1 {offsets = [0, 0], sizes = [64, 8], strides = [1, 1]} : vector<64x32xf32> to vector<64x8xf32>
    %3 = vector.extract_strided_slice %1 {offsets = [0, 24], sizes = [64, 8], strides = [1, 1]} : vector<64x32xf32> to vector<64x8xf32>
    %4 = vector.extract_strided_slice %3 {offsets = [0, 0], sizes = [1, 8], strides = [1, 1]} : vector<64x8xf32> to vector<1x8xf32>
    %5 = vector.extract_strided_slice %3 {offsets = [0, 0], sizes = [63, 8], strides = [1, 1]} : vector<64x8xf32> to vector<63x8xf32>
    %6 = tpu.concatenate %4, %5 in 0 : vector<1x8xf32>, vector<63x8xf32> -> vector<64x8xf32>
    %7 = vector.extract_strided_slice %2 {offsets = [1, 0], sizes = [63, 8], strides = [1, 1]} : vector<64x8xf32> to vector<63x8xf32>
    %8 = vector.extract_strided_slice %2 {offsets = [63, 0], sizes = [1, 8], strides = [1, 1]} : vector<64x8xf32> to vector<1x8xf32>
    %9 = tpu.concatenate %7, %8 in 0 : vector<63x8xf32>, vector<1x8xf32> -> vector<64x8xf32>
    %10 = tpu.iota {dimensions = array<i32: 0>} : vector<64x8xi32>
    %c2_i32 = arith.constant 2 : i32
    %c0_i32 = arith.constant 0 : i32
    %11 = arith.cmpi eq, %c2_i32, %c0_i32 : i32
    %c1_i32 = arith.constant 1 : i32
    %12 = arith.select %11, %c1_i32, %c2_i32 : i32
    %13 = vector.broadcast %12 : i32 to vector<64x8xi32>
    %14 = arith.remsi %10, %13 : vector<64x8xi32>
    %c0_i32_2 = arith.constant 0 : i32
    %15 = vector.broadcast %c0_i32_2 : i32 to vector<64x8xi32>
    %16 = arith.cmpi ne, %14, %15 : vector<64x8xi32>
    %c0_i32_3 = arith.constant 0 : i32
    %17 = vector.broadcast %c0_i32_3 : i32 to vector<64x8xi32>
    %18 = arith.cmpi slt, %14, %17 : vector<64x8xi32>
    %c0_i32_4 = arith.constant 0 : i32
    %19 = arith.cmpi slt, %12, %c0_i32_4 : i32
    %20 = vector.broadcast %19 : i1 to vector<64x8xi1>
    %21 = vector.broadcast %20 : vector<64x8xi1> to vector<64x8xi1>
    %22 = arith.xori %18, %21 : vector<64x8xi1>
    %23 = arith.andi %22, %16 : vector<64x8xi1>
    %24 = vector.broadcast %12 : i32 to vector<64x8xi32>
    %25 = arith.addi %14, %24 : vector<64x8xi32>
    %26 = arith.select %23, %25, %14 : vector<64x8xi1>, vector<64x8xi32>
    %c0_i32_5 = arith.constant 0 : i32
    %27 = vector.broadcast %c0_i32_5 : i32 to vector<64x8xi32>
    %28 = arith.cmpi eq, %26, %27 : vector<64x8xi32>
    %29 = arith.select %28, %2, %6 : vector<64x8xi1>, vector<64x8xf32>
    %c1_i32_6 = arith.constant 1 : i32
    %30 = vector.broadcast %c1_i32_6 : i32 to vector<64x8xi32>
    %31 = arith.cmpi eq, %26, %30 : vector<64x8xi32>
    %32 = arith.select %31, %3, %9 : vector<64x8xi1>, vector<64x8xf32>
    %c0_7 = arith.constant 0 : index
    %c0_8 = arith.constant 0 : index
    %33 = vector.load %arg3[%c0_7, %c0_8] : memref<32x128xf32, #tpu.memory_space<vmem>>, vector<32x128xf32>
    %cst = arith.constant dense<0.000000e+00> : vector<64x128xf32>
    %34 = tpu.matmul %1, %33, %cst {dimension_numbers = #tpu.dot_dimension_numbers<[1], [0], [0], [1], [0, 0, 1, 1], [], []>} : vector<64x32xf32>, vector<32x128xf32>, vector<64x128xf32> -> vector<64x128xf32>
    %c0_9 = arith.constant 0 : index
    %c0_10 = arith.constant 0 : index
    %35 = vector.load %arg4[%c0_9, %c0_10] : memref<8x128xf32, #tpu.memory_space<vmem>>, vector<8x128xf32>
    %cst_11 = arith.constant dense<0.000000e+00> : vector<64x128xf32>
    %36 = tpu.matmul %29, %35, %cst_11 {dimension_numbers = #tpu.dot_dimension_numbers<[1], [0], [0], [1], [0, 0, 1, 1], [], []>} : vector<64x8xf32>, vector<8x128xf32>, vector<64x128xf32> -> vector<64x128xf32>
    %37 = arith.addf %34, %36 : vector<64x128xf32>
    %c0_12 = arith.constant 0 : index
    %c0_13 = arith.constant 0 : index
    %38 = vector.load %arg5[%c0_12, %c0_13] : memref<8x128xf32, #tpu.memory_space<vmem>>, vector<8x128xf32>
    %cst_14 = arith.constant dense<0.000000e+00> : vector<64x128xf32>
    %39 = tpu.matmul %32, %38, %cst_14 {dimension_numbers = #tpu.dot_dimension_numbers<[1], [0], [0], [1], [0, 0, 1, 1], [], []>} : vector<64x8xf32>, vector<8x128xf32>, vector<64x128xf32> -> vector<64x128xf32>
    %40 = arith.addf %37, %39 : vector<64x128xf32>
    %c0_15 = arith.constant 0 : index
    %c0_16 = arith.constant 0 : index
    %c0_17 = arith.constant 0 : index
    %41 = vector.load %arg1[%c0_15, %c0_16, %c0_17] : memref<1x64x128xf32, #tpu.memory_space<vmem>>, vector<1x64x128xf32>
    %42 = vector.shape_cast %41 : vector<1x64x128xf32> to vector<64x128xf32>
    %cst_18 = arith.constant dense<0.000000e+00> : vector<64xf32>
    %43 = vector.multi_reduction <add>, %42, %cst_18 [1] : vector<64x128xf32> to vector<64xf32>
    %44 = vector.shape_cast %43 : vector<64xf32> to vector<64x1xf32>
    %cst_19 = arith.constant 3.906250e-03 : f32
    %45 = vector.broadcast %cst_19 : f32 to vector<64x1xf32>
    %46 = arith.mulf %44, %45 : vector<64x1xf32>
    %cst_20 = arith.constant dense<0.000000e+00> : vector<64xf32>
    %47 = vector.multi_reduction <add>, %40, %cst_20 [1] : vector<64x128xf32> to vector<64xf32>
    %48 = vector.shape_cast %47 : vector<64xf32> to vector<64x1xf32>
    %cst_21 = arith.constant 3.906250e-03 : f32
    %49 = vector.broadcast %cst_21 : f32 to vector<64x1xf32>
    %50 = arith.mulf %48, %49 : vector<64x1xf32>
    %c0_22 = arith.constant 0 : index
    %c0_23 = arith.constant 0 : index
    %51 = vector.load %arg6[%c0_22, %c0_23] : memref<2x64xf32, #tpu.memory_space<vmem>>, vector<2x64xf32>
    %cst_24 = arith.constant dense<0.000000e+00> : vector<2x1xf32>
    %52 = tpu.matmul %51, %46, %cst_24 {dimension_numbers = #tpu.dot_dimension_numbers<[1], [0], [0], [1], [0, 0, 1, 1], [], []>} : vector<2x64xf32>, vector<64x1xf32>, vector<2x1xf32> -> vector<2x1xf32>
    %c0_25 = arith.constant 0 : index
    %c0_26 = arith.constant 0 : index
    %53 = vector.load %arg7[%c0_25, %c0_26] : memref<2x64xf32, #tpu.memory_space<vmem>>, vector<2x64xf32>
    %cst_27 = arith.constant dense<0.000000e+00> : vector<2x1xf32>
    %54 = tpu.matmul %53, %50, %cst_27 {dimension_numbers = #tpu.dot_dimension_numbers<[1], [0], [0], [1], [0, 0, 1, 1], [], []>} : vector<2x64xf32>, vector<64x1xf32>, vector<2x1xf32> -> vector<2x1xf32>
    %55 = arith.addf %52, %54 : vector<2x1xf32>
    %cst_28 = arith.constant 0.000000e+00 : f32
    %56 = vector.broadcast %cst_28 : f32 to vector<2x1xf32>
    %57 = arith.maximumf %55, %56 : vector<2x1xf32>
    %c0_29 = arith.constant 0 : index
    %c0_30 = arith.constant 0 : index
    %58 = vector.load %arg8[%c0_29, %c0_30] : memref<64x2xf32, #tpu.memory_space<vmem>>, vector<64x2xf32>
    %cst_31 = arith.constant dense<0.000000e+00> : vector<64x1xf32>
    %59 = tpu.matmul %58, %57, %cst_31 {dimension_numbers = #tpu.dot_dimension_numbers<[1], [0], [0], [1], [0, 0, 1, 1], [], []>} : vector<64x2xf32>, vector<2x1xf32>, vector<64x1xf32> -> vector<64x1xf32>
    %60 = arith.negf %59 : vector<64x1xf32>
    %61 = math.exp %60 : vector<64x1xf32>
    %cst_32 = arith.constant 1.000000e+00 : f32
    %62 = vector.broadcast %cst_32 : f32 to vector<64x1xf32>
    %63 = arith.addf %62, %61 : vector<64x1xf32>
    %64 = arith.divf %62, %63 : vector<64x1xf32>
    %65 = arith.addf %42, %40 : vector<64x128xf32>
    %66 = vector.broadcast %64 : vector<64x1xf32> to vector<64x128xf32>
    %67 = arith.mulf %65, %66 : vector<64x128xf32>
    %c0_33 = arith.constant 0 : index
    %c0_34 = arith.constant 0 : index
    %c0_35 = arith.constant 0 : index
    %68 = vector.load %arg9[%c0_33, %c0_34, %c0_35] : memref<1x64x128xf32, #tpu.memory_space<vmem>>, vector<1x64x128xf32>
    %69 = vector.shape_cast %68 : vector<1x64x128xf32> to vector<64x128xf32>
    %70 = vector.shape_cast %67 : vector<64x128xf32> to vector<1x64x128xf32>
    tpu.vector_store %arg9[%c0_33, %c0_34, %c0_35], %70 {strides = array<i32>} : memref<1x64x128xf32, #tpu.memory_space<vmem>>, vector<1x64x128xf32>,
    return
  }
  func.func @transform_0(%arg0: i32) -> (i32, i32, i32) {
    %c0_i32 = arith.constant 0 : i32
    %c0_i32_0 = arith.constant 0 : i32
    %c0_i32_1 = arith.constant 0 : i32
    return %arg0, %c0_i32, %c0_i32_0 : i32, i32, i32
  }
  func.func @transform_1(%arg0: i32) -> (i32, i32, i32) {
    %c0_i32 = arith.constant 0 : i32
    %c0_i32_0 = arith.constant 0 : i32
    %c0_i32_1 = arith.constant 0 : i32
    return %arg0, %c0_i32, %c0_i32_0 : i32, i32, i32
  }
  func.func @transform_2(%arg0: i32) -> (i32, i32) {
    %c0_i32 = arith.constant 0 : i32
    %c0_i32_0 = arith.constant 0 : i32
    %c0_i32_1 = arith.constant 0 : i32
    return %c0_i32, %c0_i32_0 : i32, i32
  }
  func.func @transform_3(%arg0: i32) -> (i32, i32) {
    %c0_i32 = arith.constant 0 : i32
    %c0_i32_0 = arith.constant 0 : i32
    %c0_i32_1 = arith.constant 0 : i32
    return %c0_i32, %c0_i32_0 : i32, i32
  }
  func.func @transform_4(%arg0: i32) -> (i32, i32) {
    %c0_i32 = arith.constant 0 : i32
    %c0_i32_0 = arith.constant 0 : i32
    %c0_i32_1 = arith.constant 0 : i32
    return %c0_i32, %c0_i32_0 : i32, i32
  }
  func.func @transform_5(%arg0: i32) -> (i32, i32) {
    %c0_i32 = arith.constant 0 : i32
    %c0_i32_0 = arith.constant 0 : i32
    %c0_i32_1 = arith.constant 0 : i32
    return %c0_i32, %c0_i32_0 : i32, i32
  }
  func.func @transform_6(%arg0: i32) -> (i32, i32) {
    %c0_i32 = arith.constant 0 : i32
    %c0_i32_0 = arith.constant 0 : i32
    %c0_i32_1 = arith.constant 0 : i32
    return %c0_i32, %c0_i32_0 : i32, i32
  }
  func.func @transform_7(%arg0: i32) -> (i32, i32) {
    %c0_i32 = arith.constant 0 : i32
    %c0_i32_0 = arith.constant 0 : i32
    %c0_i32_1 = arith.constant 0 : i32
    return %c0_i32, %c0_i32_0 : i32, i32
  }
  func.func @transform_8(%arg0: i32) -> (i32, i32, i32) {
    %c0_i32 = arith.constant 0 : i32
    %c0_i32_0 = arith.constant 0 : i32
    %c0_i32_1 = arith.constant 0 : i32
    return %arg0, %c0_i32, %c0_i32_0 : i32, i32, i32
  }
}

</mosaic_0001>

<bundles_post_ra>
// kernel: apply.1
= control target key start
LH: loop header
LB: loop body
LE: loop exit
PB: predicated region body
PF: predicated region fallthrough
CT: control target
= control target key end

     0   :  { %s1824_s27 = smov 0   ;;  %s2109_s0 = inlined_call_operand.vmem [shape: f32[2,64,128], index: 0, kind: input, shape index: {}]   ;;  %s2110_s1 = inlined_call_operand.vmem [shape: f32[2,64,32], index: 1, kind: input, shape index: {}]   ;;  %s2111_s2 = inlined_call_operand.vmem [shape: f32[32,128], index: 2, kind: input, shape index: {}]   ;;  %s2112_s3 = inlined_call_operand.vmem [shape: f32[8,128], index: 3, kind: input, shape index: {}]   ;;  %s2113_s4 = inlined_call_operand.vmem [shape: f32[8,128], index: 4, kind: input, shape index: {}]   ;;  %s2114_s5 = inlined_call_operand.vmem [shape: f32[2,64], index: 5, kind: input, shape index: {}]   ;;  %s2115_s6 = inlined_call_operand.vmem [shape: f32[2,64], index: 6, kind: input, shape index: {}]   ;;  %s2116_s7 = inlined_call_operand.vmem [shape: f32[64,2], index: 7, kind: input, shape index: {}]   ;;  %s2117_s8 = inlined_call_operand.vmem [shape: f32[2,64,128], index: 8, kind: output, shape index: {}]  }
   0x1 LB: > { %s1503_s28 = sadd.s32 4294967295, %s1772_s27   ;;  %p1507_p0 = scmp.ge.s32.totalorder %s1772_s27, 1  ;;  %s1772_s27 = sphi %s1824_s27, %s18_s27  }
   0x2   : > { %p272_p1 = scmp.lt.s32.totalorder %s1772_s27, 3 }
   0x4   : > { %p273_p2 = pnand %p1507_p0, %p272_p1 }
   0x5   : > { %p311_p3 = scmp.lt.s32.totalorder (!%p273_p2), %s1503_s28, 1  ;;  %s1774_s11 = smov (!%p273_p2), 24  }
   0x6   : > { %276 = sbr.rel (%p273_p2) target bundleno = 1198 (0x4ae), region = 52  ;;  %s1775_s24 = smov (!%p273_p2), 104  }
   0xb   : > { %s2121_s28 = smov (!%p311_p3, %s1503_s28), 1  ;;  %vm360_vm0 = vcmask 1046528   ;;  %v568_v19 = vld [vmem:[%s2111_s2 + $0x18] sm:$0xff]  ;;  %v567_v20 = vld [vmem:[%s2111_s2 + $0x10] sm:$0xff]  ;;  %v569_v23 = vld [vmem:[%s2112_s3] sm:$0xff]  ;;  %vm700_vm1 = vcmask 261120   ;;  %v378_v46 = vlaneseq }
   0xc   : > { %s1832_s29 = sshll.u32 %s2121_s28, 6  ;;  %1633 = vmatprep.subr.mxu1 %v568_v19  ;;  %v566_v25 = vld [vmem:[%s2111_s2 + $0x8] sm:$0xff]  ;;  %1619 = vmatprep.subr.mxu0 %v569_v23  ;;  %v565_v26 = vld [vmem:[%s2111_s2] sm:$0xff]  ;;  %vm342_vm2 = vcmask 1040384   ;;  %vm570_vm13 = vcmask 64512  }
   0xd   : > { %s320_s10 = scalar_lea.vmem %s2110_s1, %s1832_s29  ;;  %1634 = vmatpush3.msra.mxu1 %v568_v19  ;;  %1620 = vmatpush3.msra.mxu0 %v569_v23  ;;  %v1894_v29 = vld [vmem:[%s2113_s4] sm:$0xff]  ;;  %v379_v47 = vshrl.u32 %v378_v46, 7  ;;  %s1992_s28 = scalar_lea.vmem %s2109_s0, %s1832_s29 }
   0xe   : > { %v1838_v0 = vld [vmem:[%s320_s10] sm:$0xff]  ;;  %v1840_v1 = vld [vmem:[%s320_s10 + $0x8] sm:$0xff]  ;;  %v1842_v2 = vld [vmem:[%s320_s10 + $0x10] sm:$0xff]  ;;  %1635 = vmatprep.subr.mxu1 %v567_v20  ;;  %1653 = vmatprep.subr.mxu0 %v1894_v29 }
   0xf   : > { %v361_v3 = vrot.slane %v1838_v0, 1  ;;  %v362_v4 = vrot.slane %v1840_v1, 1  ;;  %v1846_v5 = vld [vmem:[%s320_s10 + $0x18] sm:$0xff]  ;;  %v364_v6 = vrot.slane %v1842_v2, 1  ;;  %v1849_v7 = vld [vmem:[%s320_s10 + $0x20] sm:$0xff]  ;;  %v1853_v10 = vld [vmem:[%s320_s10 + $0x28] sm:$0xff]  ;;  %1636 = vmatpush3.msra.mxu1 %v567_v20  ;;  %1641 = vmatprep.mubr.msk.f32.mxu1 %vm700_vm1, %v1838_v0 }
  0x10   : > { %v366_v8 = vrot.slane %v1846_v5, 1  ;;  %v368_v9 = vrot.slane %v1849_v7, 1  ;;  %v1856_v12 = vld [vmem:[%s320_s10 + $0x30] sm:$0xff]  ;;  %v370_v15 = vrot.slane %v1853_v10, 1  ;;  %v1865_v18 = vld [vmem:[%s320_s10 + $0x38] sm:$0xff]  ;;  %v343_v28 = vrot.slane %v1838_v0, 7  ;;  %1637 = vmatprep.subr.mxu1 %v566_v25  ;;  %s325_s10 = scalar_lea.vmem %s2117_s8, %s1832_s29 }
  0x11   : > { %v363_v11 = vsel %vm360_vm0, %v361_v3, %v362_v4  ;;  %v365_v14 = vsel %vm360_vm0, %v362_v4, %v364_v6  ;;  %v372_v17 = vrot.slane %v1856_v12, 1  ;;  %v374_v22 = vrot.slane %v1865_v18, 1  ;;  %1638 = vmatpush3.msra.mxu1 %v566_v25 }
  0x12   : > { %533 = vrot.lane.b32.xlu0 %v363_v11, %s1774_s11  ;;  %v367_v13 = vsel %vm360_vm0, %v364_v6, %v366_v8  ;;  %v369_v16 = vsel %vm360_vm0, %v366_v8, %v368_v9  ;;  %v371_v21 = vsel %vm360_vm0, %v368_v9, %v370_v15  ;;  %v344_v31 = vrot.slane %v1840_v1, 7  ;;  %1639 = vmatprep.subr.mxu1 %v565_v26 }
  0x13   : > { %537 = vrot.lane.b32.xlu1 %v367_v13, %s1774_s11  ;;  %v373_v24 = vsel %vm360_vm0, %v370_v15, %v372_v17  ;;  %v375_v27 = vsel %vm360_vm0, %v372_v17, %v374_v22  ;;  %v377_v30 = vsel %vm360_vm0, %v374_v22, %v1865_v18  ;;  %1640 = vmatpush3.msra.mxu1 %v565_v26  ;;  %v346_v33 = vrot.slane %v1842_v2, 7 }
  0x14   : > { %v359_v32 = vsel %vm342_vm2, %v1838_v0, %v343_v28  ;;  %1642 = vmatmul.mubr.msk.f32.vlgmr.msra.gmra.mxu1 %vm700_vm1, %v1840_v1  ;;  %v345_v34 = vsel %vm342_vm2, %v343_v28, %v344_v31  ;;  %v348_v35 = vrot.slane %v1846_v5, 7  ;;  %v350_v37 = vrot.slane %v1849_v7, 7 }
  0x15   : > { %1644 = vmatprep.mubr.msk.f32.mxu1 %vm700_vm1, %v1842_v2  ;;  %v347_v36 = vsel %vm342_vm2, %v344_v31, %v346_v33  ;;  %v352_v39 = vrot.slane %v1853_v10, 7  ;;  %v354_v41 = vrot.slane %v1856_v12, 7  ;;  %v356_v43 = vrot.slane %v1865_v18, 7 }
  0x16   : > { %535 = vrot.lane.b32.xlu0 %v365_v14, %s1774_s11  ;;  %v349_v38 = vsel %vm342_vm2, %v346_v33, %v348_v35  ;;  %v351_v40 = vsel %vm342_vm2, %v348_v35, %v350_v37  ;;  %v381_v48 = vadd.s32 16, %v379_v47  ;;  %v391_v49 = vand.u32 1, %v379_v47 }
  0x17   : > { %539 = vrot.lane.b32.xlu1 %v369_v16, %s1774_s11  ;;  %v353_v42 = vsel %vm342_vm2, %v350_v37, %v352_v39  ;;  %v355_v44 = vsel %vm342_vm2, %v352_v39, %v354_v41  ;;  %v357_v45 = vsel %vm342_vm2, %v354_v41, %v356_v43  ;;  %v380_v50 = vadd.s32 8, %v379_v47  ;;  %v1999_v41 = vld [vmem:[%s1992_s28 + $0x30] sm:$0xff]  ;;  %v2007_v43 = vld [vmem:[%s1992_s28 + $0x20] sm:$0xff] }
  0x18   : > { %1645 = vmatmul.mubr.msk.f32.gmra.mxu1 %vm700_vm1, %v1846_v5  ;;  %v405_v51 = vand.u32 1, %v381_v48  ;;  %v382_v52 = vadd.s32 24, %v379_v47  ;;  %vm524_vm3 = vcmp.eq.s32.totalorder %v391_v49, 1  ;;  %v383_v54 = vadd.s32 32, %v379_v47 }
  0x19   : > { %1647 = vmatprep.mubr.msk.f32.mxu1 %vm700_vm1, %v1849_v7  ;;  %v398_v53 = vand.u32 1, %v380_v50  ;;  %v384_v58 = vadd.s32 40, %v379_v47  ;;  %v385_v62 = vadd.s32 48, %v379_v47  ;;  %v386_v6 = vadd.s32 56, %v379_v47 }
  0x1a   : > { %541 = vrot.lane.b32.xlu0 %v371_v21, %s1774_s11  ;;  %vm1941_vm4 = vcmp.eq.s32.totalorder %v405_v51, 1  ;;  %v412_v57 = vand.u32 1, %v382_v52  ;;  %v419_v61 = vand.u32 1, %v383_v54  ;;  %vm483_vm11 = vcmp.eq.s32.totalorder %v391_v49, 0 }
  0x1b   : > { %543 = vrot.lane.b32.xlu1 %v373_v24, %s1774_s11  ;;  %vm525_vm5 = vcmp.eq.s32.totalorder %v398_v53, 1  ;;  %v426_v4 = vand.u32 1, %v384_v58  ;;  %v433_v11 = vand.u32 1, %v385_v62  ;;  %v440_v15 = vand.u32 1, %v386_v6 }
  0x1c   : > { %1648 = vmatmul.mubr.msk.f32.gmra.mxu1 %vm700_vm1, %v1853_v10  ;;  %vm527_vm6 = vcmp.eq.s32.totalorder %v412_v57, 1  ;;  %vm528_vm7 = vcmp.eq.s32.totalorder %v419_v61, 1  ;;  %vm484_vm12 = vcmp.eq.s32.totalorder %v398_v53, 0  ;;  %vm485_vm14 = vcmp.eq.s32.totalorder %v405_v51, 0 }
  0x1d   : > { %1650 = vmatprep.mubr.msk.f32.mxu1 %vm700_vm1, %v1856_v12  ;;  %vm529_vm8 = vcmp.eq.s32.totalorder %v426_v4, 1  ;;  %vm530_vm9 = vcmp.eq.s32.totalorder %v433_v11, 1  ;;  %vm531_vm10 = vcmp.eq.s32.totalorder %v440_v15, 1  ;;  %vm486_vm15 = vcmp.eq.s32.totalorder %v412_v57, 0 }
  0x1e   : > { %545 = vrot.lane.b32.xlu0 %v375_v27, %s1774_s11  ;;  %vm487_vm0 = vcmp.eq.s32.totalorder %v419_v61, 0  ;;  %vm489_vm2 = vcmp.eq.s32.totalorder %v433_v11, 0  ;;  %v979_v11 = vld [vmem:[%s1992_s28 + $0x18] sm:$0xff] }
  0x1f   : > { %547 = vrot.lane.b32.xlu1 %v377_v30, %s1774_s11 }
  0x20   : > { %1651 = vmatmul.mubr.msk.f32.gmra.mxu1 %vm700_vm1, %v1865_v18  ;;  %vm488_vm1 = vcmp.eq.s32.totalorder %v426_v4, 0 }
  0x22   : > { %492 = vrot.lane.b32.xlu0 %v359_v32, %s1775_s24 }
  0x23   : > { %494 = vrot.lane.b32.xlu1 %v345_v34, %s1775_s24 }
  0x26   : > { %496 = vrot.lane.b32.xlu0 %v347_v36, %s1775_s24 }
  0x27   : > { %498 = vrot.lane.b32.xlu1 %v349_v38, %s1775_s24 }
  0x2a   : > { %500 = vrot.lane.b32.xlu0 %v351_v40, %s1775_s24  ;;  %v1995_v40 = vld [vmem:[%s1992_s28 + $0x38] sm:$0xff] }
  0x2b   : > { %502 = vrot.lane.b32.xlu1 %v353_v42, %s1775_s24  ;;  %v2002_v42 = vld [vmem:[%s1992_s28 + $0x28] sm:$0xff] }
  0x2e   : > { %504 = vrot.lane.b32.xlu0 %v355_v44, %s1775_s24  ;;  %v1776_v44 = vmov 0.0  }
  0x2f   : > { %506 = vrot.lane.b32.xlu1 %v357_v45, %s1775_s24  ;;  %1667 = vmatprep.subr.mxu1 %v1776_v44 }
  0x84   : > { %v534_v55 = vpop.permute.xlu0 %533 }
  0x85   : > { %v557_v59 = vsel %vm524_vm3, %v1838_v0, %v534_v55  ;;  %v538_v60 = vpop.permute.xlu1 %537  ;;  %vm490_vm3 = vcmp.eq.s32.totalorder %v440_v15, 0 }
  0x86   : > { %831 = vrot.lane.b32.xlu0 %v557_v59, %s1775_s24  ;;  %v559_v63 = vsel %vm1941_vm4, %v1842_v2, %v538_v60  ;;  %v977_v59 = vld [vmem:[%s1992_s28 + $0x8] sm:$0xff]  ;;  %vm1777_vm4 = vmmov 0  }
  0x87   : > { %1683 = vmatprep.mubr.msk.f32.mxu1 %vm1777_vm4, %v1776_v44 }
  0x88   : > { %v536_v3 = vpop.permute.xlu0 %535 }
  0x89   : > { %v558_v8 = vsel %vm525_vm5, %v1840_v1, %v536_v3  ;;  %v540_v9 = vpop.permute.xlu1 %539  ;;  %v976_v3 = vld [vmem:[%s1992_s28] sm:$0xff]  ;;  %vm1034_vm5 = vcmask 523264  }
  0x8a   : > { %835 = vrot.lane.b32.xlu0 %v559_v63, %s1775_s24  ;;  %833 = vrot.lane.b32.xlu1 %v558_v8, %s1775_s24  ;;  %v560_v13 = vsel %vm527_vm6, %v1846_v5, %v540_v9  ;;  %vm1190_vm6 = vcmask 15360  }
  0x8c   : > { %v542_v14 = vpop.permute.xlu0 %541 }
  0x8d   : > { %v544_v16 = vpop.permute.xlu1 %543  ;;  %v561_v17 = vsel %vm528_vm7, %v1849_v7, %v542_v14  ;;  %vm1215_vm7 = vcmask 1041408  }
  0x8e   : > { %837 = vrot.lane.b32.xlu1 %v560_v13, %s1775_s24  ;;  %839 = vrot.lane.b32.xlu0 %v561_v17, %s1775_s24  ;;  %v562_v19 = vsel %vm529_vm8, %v1853_v10, %v544_v16 }
  0x90   : > { %v546_v20 = vpop.permute.xlu0 %545 }
  0x91   : > { %v548_v21 = vpop.permute.xlu1 %547  ;;  %v563_v22 = vsel %vm530_vm9, %v1856_v12, %v546_v20 }
  0x92   : > { %841 = vrot.lane.b32.xlu1 %v562_v19, %s1775_s24  ;;  %843 = vrot.lane.b32.xlu0 %v563_v22, %s1775_s24  ;;  %v564_v23 = vsel %vm531_vm10, %v1865_v18, %v548_v21  ;;  %v978_v19 = vld [vmem:[%s1992_s28 + $0x10] sm:$0xff] }
  0x94   : > { %v493_v24 = vpop.permute.xlu0 %492 }
  0x95   : > { %v495_v25 = vpop.permute.xlu1 %494  ;;  %v516_v26 = vsel %vm483_vm11, %v1838_v0, %v493_v24 }
  0x96   : > { %845 = vrot.lane.b32.xlu1 %v564_v23, %s1775_s24  ;;  %v517_v27 = vsel %vm484_vm12, %v1840_v1, %v495_v25  ;;  %1621 = vmatprep.mubr.msk.f32.mxu0 %vm570_vm13, %v516_v26 }
  0x97   : > { %1622 = vmatmul.mubr.msk.f32.vlgmr.msra.gmra.mxu0 %vm570_vm13, %v517_v27 }
  0x98   : > { %v497_v28 = vpop.permute.xlu0 %496  ;;  %1654 = vmatpush3.msra.mxu0 %v1894_v29 }
  0x99   : > { %v518_v30 = vsel %vm485_vm14, %v1842_v2, %v497_v28  ;;  %v499_v31 = vpop.permute.xlu1 %498  ;;  %1686 = vmatprep.subr.mxu0 %v1776_v44 }
  0x9a   : > { %v519_v32 = vsel %vm486_vm15, %v1846_v5, %v499_v31  ;;  %1624 = vmatprep.mubr.msk.f32.mxu0 %vm570_vm13, %v518_v30 }
  0x9b   : > { %1625 = vmatmul.mubr.msk.f32.gmra.mxu0 %vm570_vm13, %v519_v32 }
  0x9c   : > { %v501_v0 = vpop.permute.xlu0 %500 }
  0x9d   : > { %v520_v1 = vsel %vm487_vm0, %v1849_v7, %v501_v0  ;;  %v503_v33 = vpop.permute.xlu1 %502 }
  0x9e   : > { %v521_v34 = vsel %vm488_vm1, %v1853_v10, %v503_v33  ;;  %1627 = vmatprep.mubr.msk.f32.mxu0 %vm570_vm13, %v520_v1 }
  0x9f   : > { %1628 = vmatmul.mubr.msk.f32.gmra.mxu0 %vm570_vm13, %v521_v34 }
  0xa0   : > { %v505_v2 = vpop.permute.xlu0 %504 }
  0xa1   : > { %v522_v5 = vsel %vm489_vm2, %v1856_v12, %v505_v2  ;;  %v507_v29 = vpop.permute.xlu1 %506 }
  0xa2   : > { %v523_v35 = vsel %vm490_vm3, %v1865_v18, %v507_v29  ;;  %1630 = vmatprep.mubr.msk.f32.mxu0 %vm570_vm13, %v522_v5 }
  0xa3   : > { %1631 = vmatmul.mubr.msk.f32.gmra.mxu0 %vm570_vm13, %v523_v35 }
  0xb1   : > { %998 = vadd.xlane.f32.xlu0 %v1995_v40 }
  0xb5   : > { %996 = vadd.xlane.f32.xlu0 %v1999_v41 }
  0xba   : > { %994 = vadd.xlane.f32.xlu1 %v2002_v42 }
  0xbe   : > { %992 = vadd.xlane.f32.xlu1 %v2007_v43 }
  0xd4   : > { %v1643_v49 = vpop.f32.mrf.mxu1 }
  0xd6   : > { %v783_v51 = vpop.f32.mrf.mxu1 }
  0xd8   : > { %v1646_v53 = vpop.f32.mrf.mxu1 }
  0xda   : > { %v793_v55 = vpop.f32.mrf.mxu1 }
  0xdc   : > { %v1649_v62 = vpop.f32.mrf.mxu1 }
  0xde   : > { %v803_v16 = vpop.f32.mrf.mxu1 }
  0xe0   : > { %v1652_v26 = vpop.f32.mrf.mxu1 }
  0xe2   : > { %v813_v34 = vpop.f32.mrf.mxu1 }
  0xf8   : > { %v832_v7 = vpop.permute.xlu0 %831 }
  0xf9   : > { %1655 = vmatprep.mubr.msk.f32.mxu0 %vm570_vm13, %v832_v7 }
  0xfc   : > { %v836_v10 = vpop.permute.xlu0 %835  ;;  %v834_v36 = vpop.permute.xlu1 %833 }
  0xfd   : > { %1656 = vmatmul.mubr.msk.f32.vlgmr.msra.gmra.mxu0 %vm570_vm13, %v834_v36 }
  0xfe   : > { %1658 = vmatprep.mubr.msk.f32.mxu0 %vm570_vm13, %v836_v10 }
 0x100   : > { %v838_v37 = vpop.permute.xlu1 %837  ;;  %v840_v38 = vpop.permute.xlu0 %839 }
 0x101   : > { %1659 = vmatmul.mubr.msk.f32.gmra.mxu0 %vm570_vm13, %v838_v37 }
 0x102   : > { %1661 = vmatprep.mubr.msk.f32.mxu0 %vm570_vm13, %v840_v38 }
 0x104   : > { %v842_v12 = vpop.permute.xlu1 %841  ;;  %v844_v18 = vpop.permute.xlu0 %843 }
 0x105   : > { %1662 = vmatmul.mubr.msk.f32.gmra.mxu0 %vm570_vm13, %v842_v12 }
 0x106   : > { %1664 = vmatprep.mubr.msk.f32.mxu0 %vm570_vm13, %v844_v18 }
 0x108   : > { %v846_v39 = vpop.permute.xlu1 %845 }
 0x109   : > { %1665 = vmatmul.mubr.msk.f32.gmra.mxu0 %vm570_vm13, %v846_v39 }
 0x10a   : > { %1702 = vmatprep.mubr.msk.f32.mxu0 %vm1777_vm4, %v1776_v44 }
 0x13a   : > { %v999_v32 = vpop.xlane.xlu0 %998 }
 0x13b   : > { %v1007_v33 = vmul.f32 0.00390625, %v999_v32 }
 0x13d   : > { %1687 = vmatpush3.msra.mxu0 %v1007_v33 }
 0x13e   : > { %v997_v2 = vpop.xlane.xlu0 %996  ;;  %1688 = vmatprep.subr.mxu0 %v1776_v44 }
 0x13f   : > { %v1006_v29 = vmul.f32 0.00390625, %v997_v2 }
 0x141   : > { %1689 = vmatpush3.msra.mxu0 %v1006_v29 }
 0x142   : > { %1690 = vmatprep.subr.mxu0 %v1776_v44 }
 0x143   : > { %v995_v5 = vpop.xlane.xlu1 %994 }
 0x144   : > { %v1005_v7 = vmul.f32 0.00390625, %v995_v5 }
 0x146   : > { %1691 = vmatpush3.msra.mxu0 %v1005_v7 }
 0x147   : > { %v993_v36 = vpop.xlane.xlu1 %992  ;;  %1692 = vmatprep.subr.mxu0 %v1776_v44 }
 0x148   : > { %v1004_v38 = vmul.f32 0.00390625, %v993_v36 }
 0x14a   : > { %1693 = vmatpush3.msra.mxu0 %v1004_v38 }
 0x14b   : > { %1694 = vmatprep.subr.mxu0 %v1776_v44 }
 0x157   : > { %v1623_v45 = vpop.f32.mrf.mxu0 }
 0x158   : > { %v789_v57 = vadd.f32 %v1643_v49, %v1623_v45 }
 0x159   : > { %v661_v46 = vpop.f32.mrf.mxu0 }
 0x15a   : > { %v784_v60 = vadd.f32 %v783_v51, %v661_v46 }
 0x15b   : > { %v1626_v47 = vpop.f32.mrf.mxu0 }
 0x15c   : > { %v799_v4 = vadd.f32 %v1646_v53, %v1626_v47 }
 0x15d   : > { %v671_v48 = vpop.f32.mrf.mxu0 }
 0x15e   : > { %v794_v13 = vadd.f32 %v793_v55, %v671_v48 }
 0x15f   : > { %v1629_v50 = vpop.f32.mrf.mxu0 }
 0x160   : > { %v809_v20 = vadd.f32 %v1649_v62, %v1629_v50 }
 0x161   : > { %v681_v52 = vpop.f32.mrf.mxu0 }
 0x162   : > { %v804_v28 = vadd.f32 %v803_v16, %v681_v52 }
 0x163   : > { %v1632_v54 = vpop.f32.mrf.mxu0 }
 0x164   : > { %v819_v30 = vadd.f32 %v1652_v26, %v1632_v54  ;;  %v1186_v26 = vld [vmem:[%s2116_s7 + $0x20] sm:$0xff] }
 0x165   : > { %v691_v56 = vpop.f32.mrf.mxu0 }
 0x166   : > { %v814_v10 = vadd.f32 %v813_v34, %v691_v56 }
 0x1bd   : > { %v1657_v58 = vpop.f32.mrf.mxu0 }
 0x1be   : > { %v969_v61 = vadd.f32 %v1657_v58, %v789_v57 }
 0x1bf   : > { %v929_v63 = vpop.f32.mrf.mxu0 }
 0x1c0   : > { %v968_v6 = vadd.f32 %v929_v63, %v784_v60  ;;  %v2014_v8 = vadd.f32 %v977_v59, %v969_v61  ;;  %v1032_v63 = vld [vmem:[%s2114_s5] sm:$0x3] }
 0x1c1   : > { %v1660_v9 = vpop.f32.mrf.mxu0 }
 0x1c2   : > { %v971_v14 = vadd.f32 %v1660_v9, %v799_v4  ;;  %v2017_v15 = vadd.f32 %v976_v3, %v968_v6  ;;  %v1033_v9 = vld [vmem:[%s2115_s6] sm:$0x3] }
 0x1c3   : > { %v939_v17 = vpop.f32.mrf.mxu0 }
 0x1c4   : > { %v970_v21 = vadd.f32 %v939_v17, %v794_v13  ;;  %v2020_v22 = vadd.f32 %v979_v11, %v971_v14 }
 0x1c5   : > { %v1663_v23 = vpop.f32.mrf.mxu0 }
 0x1c6   : > { %v2022_v24 = vadd.f32 %v1663_v23, %v809_v20  ;;  %v2024_v25 = vadd.f32 %v978_v19, %v970_v21  ;;  %v1185_v23 = vld [vmem:[%s2116_s7 + $0x18] sm:$0xff] }
 0x1c7   : > { %v949_v27 = vpop.f32.mrf.mxu0 }
 0x1c8   : > { %1018 = vadd.xlane.f32.xlu0 %v2022_v24  ;;  %v2027_v0 = vadd.f32 %v949_v27, %v804_v28  ;;  %v1187_v27 = vld [vmem:[%s2116_s7 + $0x28] sm:$0xff]  ;;  %v1188_v28 = vld [vmem:[%s2116_s7 + $0x30] sm:$0xff] }
 0x1c9   : > { %v1666_v31 = vpop.f32.mrf.mxu0 }
 0x1ca   : > { %v2029_v1 = vadd.f32 %v1666_v31, %v819_v30  ;;  %v1189_v30 = vld [vmem:[%s2116_s7 + $0x38] sm:$0xff]  ;;  %v1778_v31 = vmov 0  }
 0x1cb   : > { %v959_v35 = vpop.f32.mrf.mxu0  ;;  %1733 = vset.pattern.permute.xlu0 %v1778_v31  ;;  %1732 = vset.pattern.permute.xlu1 %v1778_v31 }
 0x1cc   : > { %1016 = vadd.xlane.f32.xlu0 %v2027_v0  ;;  %1022 = vadd.xlane.f32.xlu1 %v2029_v1  ;;  %v2034_v37 = vadd.f32 %v959_v35, %v814_v10 }
 0x1d0   : > { %1014 = vadd.xlane.f32.xlu0 %v971_v14  ;;  %990 = vadd.xlane.f32.xlu1 %v979_v11  ;;  %v1182_v11 = vld [vmem:[%s2116_s7] sm:$0xff] }
 0x1d4   : > { %1020 = vadd.xlane.f32.xlu0 %v2034_v37  ;;  %988 = vadd.xlane.f32.xlu1 %v978_v19 }
 0x1d8   : > { %1012 = vadd.xlane.f32.xlu0 %v970_v21  ;;  %986 = vadd.xlane.f32.xlu1 %v977_v59  ;;  %v1184_v21 = vld [vmem:[%s2116_s7 + $0x10] sm:$0xff] }
 0x1dc   : > { %1010 = vadd.xlane.f32.xlu0 %v969_v61  ;;  %984 = vadd.xlane.f32.xlu1 %v976_v3 }
 0x1e0   : > { %1008 = vadd.xlane.f32.xlu0 %v968_v6 }
 0x251   : > { %v1019_v12 = vpop.xlane.xlu0 %1018 }
 0x252   : > { %v1029_v53 = vmul.f32 0.00390625, %v1019_v12 }
 0x255   : > { %v1017_v18 = vpop.xlane.xlu0 %1016  ;;  %v1023_v39 = vpop.xlane.xlu1 %1022 }
 0x256   : > { %v1031_v45 = vmul.f32 0.00390625, %v1023_v39  ;;  %v1028_v56 = vmul.f32 0.00390625, %v1017_v18 }
 0x258   : > { %1668 = vmatpush3.msra.mxu1 %v1031_v45 }
 0x259   : > { %v1015_v46 = vpop.xlane.xlu0 %1014  ;;  %v991_v47 = vpop.xlane.xlu1 %990  ;;  %1669 = vmatprep.subr.mxu1 %v1776_v44 }
 0x25a   : > { %v1003_v48 = vmul.f32 0.00390625, %v991_v47  ;;  %v1027_v58 = vmul.f32 0.00390625, %v1015_v46 }
 0x25c   : > { %1695 = vmatpush3.msra.mxu0 %v1003_v48 }
 0x25d   : > { %v1021_v49 = vpop.xlane.xlu0 %1020  ;;  %v989_v50 = vpop.xlane.xlu1 %988  ;;  %1696 = vmatprep.subr.mxu0 %v1776_v44 }
 0x25e   : > { %v1030_v51 = vmul.f32 0.00390625, %v1021_v49  ;;  %v1002_v52 = vmul.f32 0.00390625, %v989_v50 }
 0x260   : > { %1670 = vmatpush3.msra.mxu1 %v1030_v51  ;;  %1697 = vmatpush3.msra.mxu0 %v1002_v52 }
 0x261   : > { %v1013_v54 = vpop.xlane.xlu0 %1012  ;;  %1671 = vmatprep.subr.mxu1 %v1776_v44  ;;  %v987_v55 = vpop.xlane.xlu1 %986  ;;  %1698 = vmatprep.subr.mxu0 %v1776_v44 }
 0x262   : > { %1672 = vmatpush3.msra.mxu1 %v1029_v53  ;;  %v1001_v57 = vmul.f32 0.00390625, %v987_v55  ;;  %v1026_v61 = vmul.f32 0.00390625, %v1013_v54 }
 0x263   : > { %1673 = vmatprep.subr.mxu1 %v1776_v44 }
 0x264   : > { %1674 = vmatpush3.msra.mxu1 %v1028_v56  ;;  %1699 = vmatpush3.msra.mxu0 %v1001_v57 }
 0x265   : > { %v1011_v59 = vpop.xlane.xlu0 %1010  ;;  %1675 = vmatprep.subr.mxu1 %v1776_v44  ;;  %v985_v60 = vpop.xlane.xlu1 %984  ;;  %1700 = vmatprep.subr.mxu0 %v1776_v44 }
 0x266   : > { %1676 = vmatpush3.msra.mxu1 %v1027_v58  ;;  %v1000_v62 = vmul.f32 0.00390625, %v985_v60  ;;  %v1025_v3 = vmul.f32 0.00390625, %v1011_v59 }
 0x267   : > { %1677 = vmatprep.subr.mxu1 %v1776_v44 }
 0x268   : > { %1678 = vmatpush3.msra.mxu1 %v1026_v61  ;;  %1701 = vmatpush3.msra.mxu0 %v1000_v62 }
 0x269   : > { %v1009_v4 = vpop.xlane.xlu0 %1008  ;;  %1679 = vmatprep.subr.mxu1 %v1776_v44  ;;  %1703 = vmatmul.mubr.msk.f32.vlgmr.msra.gmra.mxu0 %vm1034_vm5, %v1032_v63 }
 0x26a   : > { %v1024_v6 = vmul.f32 0.00390625, %v1009_v4  ;;  %1680 = vmatpush3.msra.mxu1 %v1025_v3 }
 0x26b   : > { %1681 = vmatprep.subr.mxu1 %v1776_v44  ;;  %v1183_v44 = vld [vmem:[%s2116_s7 + $0x8] sm:$0xff] }
 0x26c   : > { %1682 = vmatpush3.msra.mxu1 %v1024_v6 }
 0x26d   : > { %1684 = vmatmul.mubr.msk.f32.vlgmr.msra.gmra.mxu1 %vm1034_vm5, %v1033_v9 }
 0x26e   : > { %1707 = vmatprep.mubr.msk.f32.mxu1 %vm1190_vm6, %v1182_v11 }
 0x329   : > { %v1177_v13 = vpop.f32.mrf.mxu0 }
 0x32b   : > { %v1704_v14 = vpop.f32.mrf.mxu0 }
 0x32d   : > { %v1104_v16 = vpop.f32.mrf.mxu1 }
 0x32e   : > { %v1178_v17 = vadd.f32 %v1177_v13, %v1104_v16 }
 0x32f   : > { %v1685_v19 = vpop.f32.mrf.mxu1 }
 0x330   : > { %v1181_v20 = vmax.f32 %v1178_v17, 0.0 }
 0x332   : > { %1705 = vmatprep.subr.msk.mxu1 %vm1215_vm7, %v1181_v20 }
 0x333   : > { %1706 = vmatpush3.msk.msra.mxu1 %vm1215_vm7, %v1181_v20 }
 0x334   : > { %1708 = vmatmul.mubr.msk.f32.vlgmr.msra.gmra.mxu1 %vm1190_vm6, %v1183_v44 }
 0x335   : > { %1710 = vmatprep.mubr.msk.f32.mxu1 %vm1190_vm6, %v1184_v21 }
 0x338   : > { %1711 = vmatmul.mubr.msk.f32.gmra.mxu1 %vm1190_vm6, %v1185_v23 }
 0x339   : > { %1713 = vmatprep.mubr.msk.f32.mxu1 %vm1190_vm6, %v1186_v26 }
 0x33c   : > { %1714 = vmatmul.mubr.msk.f32.gmra.mxu1 %vm1190_vm6, %v1187_v27  ;;  %v1377_v27 = vadd.f32 %v2002_v42, %v2022_v24 }
 0x33d   : > { %1716 = vmatprep.mubr.msk.f32.mxu1 %vm1190_vm6, %v1188_v28 }
 0x340   : > { %1717 = vmatmul.mubr.msk.f32.gmra.mxu1 %vm1190_vm6, %v1189_v30 }
 0x3f4   : > { %v1709_v32 = vpop.f32.mrf.mxu1 }
 0x3f5   : > { %v1550_v33 = vmul.f32 -1.442695, %v1709_v32 }
 0x3f6   : > { %v1285_v34 = vpop.f32.mrf.mxu1 }
 0x3f7   : > { %1734 = vpow2.f32 %v1550_v33  ;;  %v1549_v2 = vmul.f32 -1.442695, %v1285_v34 }
 0x3f8   : > { %v1712_v5 = vpop.f32.mrf.mxu1 }
 0x3f9   : > { %1736 = vpow2.f32 %v1549_v2  ;;  %v1552_v29 = vmul.f32 -1.442695, %v1712_v5 }
 0x3fa   : > { %v1295_v35 = vpop.f32.mrf.mxu1 }
 0x3fb   : > { %1738 = vpow2.f32 %v1552_v29  ;;  %v1551_v7 = vmul.f32 -1.442695, %v1295_v35 }
 0x3fc   : > { %v1715_v10 = vpop.f32.mrf.mxu1 }
 0x3fd   : > { %1740 = vpow2.f32 %v1551_v7  ;;  %v1554_v36 = vmul.f32 -1.442695, %v1715_v10 }
 0x3fe   : > { %v1305_v38 = vpop.f32.mrf.mxu1 }
 0x3ff   : > { %1742 = vpow2.f32 %v1554_v36  ;;  %v1553_v18 = vmul.f32 -1.442695, %v1305_v38 }
 0x400   : > { %v1718_v12 = vpop.f32.mrf.mxu1 }
 0x401   : > { %1744 = vpow2.f32 %v1553_v18  ;;  %v1556_v52 = vmul.f32 -1.442695, %v1718_v12 }
 0x402   : > { %v1315_v39 = vpop.f32.mrf.mxu1 }
 0x403   : > { %v1555_v46 = vmul.f32 -1.442695, %v1315_v39 }
 0x404   : > { %v1735_v45 = vpop.eup %1734 }
 0x405   : > { %v1349_v47 = vadd.f32 1.0, %v1735_v45 }
 0x406   : > { %v1737_v48 = vpop.eup %1736 }
 0x407   : > { %1746 = vrcp.f32 %v1349_v47  ;;  %v1348_v49 = vadd.f32 1.0, %v1737_v48 }
 0x408   : > { %v1739_v50 = vpop.eup %1738  ;;  %1748 = vpow2.f32 %v1555_v46 }
 0x409   : > { %1750 = vrcp.f32 %v1348_v49  ;;  %v1351_v51 = vadd.f32 1.0, %v1739_v50 }
 0x40a   : > { %v1741_v53 = vpop.eup %1740 }
 0x40b   : > { %1752 = vrcp.f32 %v1351_v51  ;;  %v1350_v55 = vadd.f32 1.0, %v1741_v53 }
 0x40c   : > { %v1743_v54 = vpop.eup %1742  ;;  %1754 = vpow2.f32 %v1556_v52 }
 0x40d   : > { %v1353_v56 = vadd.f32 1.0, %v1743_v54  ;;  %1756 = vrcp.f32 %v1350_v55 }
 0x40e   : > { %v1745_v57 = vpop.eup %1744 }
 0x40f   : > { %1758 = vrcp.f32 %v1353_v56  ;;  %v1352_v60 = vadd.f32 1.0, %v1745_v57 }
 0x411   : > { %1760 = vrcp.f32 %v1352_v60 }
 0x414   : > { %v1747_v58 = vpop.eup %1746 }
 0x415   : > { %v1749_v59 = vpop.eup %1748  ;;  %1387 = vperm.xlu0 %1733, %v1747_v58  }
 0x416   : > { %v1751_v61 = vpop.eup %1750  ;;  %v1354_v63 = vadd.f32 1.0, %v1749_v59 }
 0x417   : > { %1382 = vperm.xlu1 %1732, %v1751_v61  }
 0x418   : > { %v1753_v62 = vpop.eup %1752  ;;  %1762 = vrcp.f32 %v1354_v63 }
 0x419   : > { %v1755_v3 = vpop.eup %1754 }
 0x41a   : > { %v1355_v4 = vadd.f32 1.0, %v1755_v3  ;;  %v1757_v6 = vpop.eup %1756 }
 0x41b   : > { %1397 = vperm.xlu1 %1732, %v1753_v62  }
 0x41c   : > { %v1759_v9 = vpop.eup %1758  ;;  %1764 = vrcp.f32 %v1355_v4 }
 0x41e   : > { %v1761_v11 = vpop.eup %1760 }
 0x41f   : > { %1392 = vperm.xlu1 %1732, %v1757_v6  }
 0x423   : > { %1407 = vperm.xlu1 %1732, %v1759_v9  }
 0x425   : > { %v1763_v13 = vpop.eup %1762 }
 0x427   : > { %1402 = vperm.xlu1 %1732, %v1761_v11  }
 0x429   : > { %v1765_v14 = vpop.eup %1764 }
 0x42b   : > { %1412 = vperm.xlu1 %1732, %v1763_v13  }
 0x42f   : > { %1417 = vperm.xlu1 %1732, %v1765_v14  }
 0x490   : > { %v1388_v16 = vpop.permute.xlu0 %1387 }
 0x491   : > { %v1421_v17 = vmul.f32 %v1388_v16, %v2014_v8  ;;  %v1376_v8 = vadd.f32 %v2007_v43, %v2027_v0 }
 0x492   : > { %v1383_v19 = vpop.permute.xlu1 %1382 }
 0x493   : > { %1429 = vst [vmem:[%s325_s10 + $0x8] sm:$0xff] %v1421_v17  ;;  %v1420_v20 = vmul.f32 %v1383_v19, %v2017_v15 }
 0x495   : > { %1428 = vst [vmem:[%s325_s10] sm:$0xff] %v1420_v20 }
 0x496   : > { %v1398_v44 = vpop.permute.xlu1 %1397 }
 0x497   : > { %v1423_v21 = vmul.f32 %v1398_v44, %v2020_v22  ;;  %v1378_v22 = vadd.f32 %v1999_v41, %v2034_v37 }
 0x499   : > { %1431 = vst [vmem:[%s325_s10 + $0x18] sm:$0xff] %v1423_v21 }
 0x49a   : > { %v1393_v23 = vpop.permute.xlu1 %1392 }
 0x49b   : > { %v1422_v26 = vmul.f32 %v1393_v23, %v2024_v25  ;;  %v1379_v25 = vadd.f32 %v1995_v40, %v2029_v1 }
 0x49d   : > { %1430 = vst [vmem:[%s325_s10 + $0x10] sm:$0xff] %v1422_v26 }
 0x49e   : > { %v1408_v28 = vpop.permute.xlu1 %1407 }
 0x49f   : > { %v1425_v30 = vmul.f32 %v1408_v28, %v1377_v27 }
 0x4a1   : > { %1433 = vst [vmem:[%s325_s10 + $0x28] sm:$0xff] %v1425_v30 }
 0x4a2   : > { %v1403_v31 = vpop.permute.xlu1 %1402 }
 0x4a3   : > { %v1424_v15 = vmul.f32 %v1403_v31, %v1376_v8 }
 0x4a5   : > { %1432 = vst [vmem:[%s325_s10 + $0x20] sm:$0xff] %v1424_v15 }
 0x4a6   : > { %v1413_v32 = vpop.permute.xlu1 %1412 }
 0x4a7   : > { %v1426_v33 = vmul.f32 %v1413_v32, %v1378_v22 }
 0x4a9   : > { %1434 = vst [vmem:[%s325_s10 + $0x30] sm:$0xff] %v1426_v33 }
 0x4aa   : > { %v1418_v34 = vpop.permute.xlu1 %1417 }
 0x4ab   : > { %v1427_v42 = vmul.f32 %v1418_v34, %v1379_v25 }
 0x4ad   : > { %1435 = vst [vmem:[%s325_s10 + $0x38] sm:$0xff] %v1427_v42 }
 0x4ae PF: > { %s18_s27 = sadd.s32 1, %s1772_s27  }
 0x4af   : > { %p15_p4 = scmp.ge.s32.totalorder %s18_s27, 4  }
 0x4b1   :  { %17 = sbr.rel (!%p15_p4) target bundleno = 1 (0x1), region = 85 }

</bundles_post_ra>
